<compile_context>
chip_gen: v6e
topology: v6e:2x2x1
jax: 0.10.0
libtpu: 0.0.40
codegen_flags: <defaults>
</compile_context>

<pallas_src>
import jax
import jax.numpy as jnp
from jax.experimental import pallas as pl
from jax.experimental.pallas import tpu as pltpu


def _round_up(x, m):
    return (x + m - 1) // m * m


def critic_kernel(state_ref, action_ref,
                  w1_ref, b1_ref,
                  w2q_ref, w2a_ref, b2_ref,
                  w3_ref, b3_ref,
                  out_ref):
    f32 = jnp.float32

    # ---- layer 1: relu(state @ W1 + b1)  (MXU, f32 accumulation) ----
    h1 = jnp.dot(state_ref[...], w1_ref[...], preferred_element_type=f32)
    h1 = jnp.maximum(h1 + b1_ref[...], 0.0)

    # ---- layer 2: relu(cat([h1, action]) @ W2 + b2)
    #            == relu(h1 @ W2_q + action @ W2_a + b2) ----
    h2 = jnp.dot(h1.astype(w2q_ref.dtype), w2q_ref[...],
                 preferred_element_type=f32) + b2_ref[...]

    action_dim = action_ref.shape[-1]
    if action_dim <= 32:
        # Small-K term on the VPU: action_dim broadcast multiply-adds over the
        # H2 lanes. Overlaps with the MXU matmul above (different issue slots)
        # and avoids a full extra MXU K-pass for K=action_dim.
        # Kept in f32: v5e has no bf16 VALU.
        a32 = action_ref[...].astype(f32)
        w2a = w2a_ref[...].astype(f32)
        for k in range(action_dim):              # static unroll, action_dim small
            h2 = h2 + a32[:, k:k + 1] * w2a[k:k + 1, :]
    else:
        h2 = h2 + jnp.dot(action_ref[...], w2a_ref[...],
                          preferred_element_type=f32)
    h2 = jnp.maximum(h2, 0.0)

    # ---- layer 3: h2 @ W3 + b3 with N=1 -> VPU multiply + XLU lane reduce ----
    # (A 1-column MXU matmul wastes 127/255 of the MXU columns; VALU/XLU are
    #  idle here, so this path is essentially free.)
    w3_row = w3_ref[...].astype(f32)                       # (1, H2)
    q = jnp.sum(h2 * w3_row, axis=-1, keepdims=True) + b3_ref[...]
    # (tb, 1) block -> masked 1-lane store; accepted (4 B/row writeback).
    out_ref[...] = q.astype(out_ref.dtype)


def critic_forward(state, action, prepared_params, *, batch_tile=1024,
                   single_buffer_weights=False):
    """Batch-tiled Pallas call. `prepared_params` from prepare_critic_params."""
    w1, b1, w2q, w2a, b2, w3r, b3 = prepared_params
    batch, state_dim = state.shape
    action_dim = action.shape[1]
    h1_dim = w1.shape[1]
    h2_dim = w2q.shape[1]

    compute_dtype = w1.dtype
    state = state.astype(compute_dtype)
    action = action.astype(compute_dtype)

    # ---- batch-tile selection ----
    h1p = _round_up(h1_dim, 128)
    h2p = _round_up(h2_dim, 128)
    if batch <= 8:
        tb = batch                         # single full tile (block dim == array dim)
    else:
        # >= 2 grid steps so both v7x TensorCores get work; 1024-row tiles
        # amortize per-step overhead on single-TC v5e/v6e.
        tb = min(batch_tile, _round_up(pl.cdiv(batch, 2), 8))
        # Cap tile so f32 intermediates stay well under v7x's 32 MiB scoped VMEM.
        act_bytes_per_row = 4 * (h1p + h2p)
        tb_cap = max(8, ((12 << 20) // act_bytes_per_row) // 8 * 8)
        tb = max(8, min(tb, tb_cap))

    # Pad batch to a multiple of tb: no partial tile reads uninitialized rows.
    padded_batch = _round_up(batch, tb)
    if padded_batch != batch:
        pad = padded_batch - batch
        state = jnp.pad(state, ((0, pad), (0, 0)))
        action = jnp.pad(action, ((0, pad), (0, 0)))
    grid = (padded_batch // tb,)

    # Batch-tiled inputs / output.
    state_spec = pl.BlockSpec((tb, state_dim), lambda i: (i, 0))
    action_spec = pl.BlockSpec((tb, action_dim), lambda i: (i, 0))
    out_spec = pl.BlockSpec((tb, 1), lambda i: (i, 0))

    # Weights/biases: constant block index -> DMA'd once, VMEM-resident across
    # batch tiles. Optionally single-buffered (second pipeline buffer is never
    # used with a constant index_map); off by default since the saving is tiny
    # at 400/300 and the double-buffered path is known-good.
    def resident(arr):
        if single_buffer_weights:
            return pl.BlockSpec(arr.shape, lambda i: (0, 0),
                                pipeline_mode=pl.Buffered(1))
        return pl.BlockSpec(arr.shape, lambda i: (0, 0))

    # ---- VMEM budget / scoped limit (v5e default is only 16 MiB) ----
    def nbytes(a):
        return a.size * a.dtype.itemsize

    itm = jnp.dtype(compute_dtype).itemsize
    sdp = _round_up(state_dim, 128)
    adp = _round_up(action_dim, 128)
    weight_bytes = sum(nbytes(p) for p in prepared_params)
    tile_bytes = (
        weight_bytes * (1 if single_buffer_weights else 2)   # resident params
        + tb * (sdp + adp) * itm * 2                         # double-buffered inputs
        + tb * 128 * 4 * 2                                   # lane-padded output tile
        + tb * (h1p + h2p) * 4)                              # f32 intermediates
    vmem_limit = int(min(32 << 20, max(16 << 20, 2 * tile_bytes)))

    flops = 2 * batch * (state_dim * h1_dim
                         + (h1_dim + action_dim) * h2_dim
                         + h2_dim)
    bytes_accessed = int(nbytes(state) + nbytes(action)
                         + weight_bytes + padded_batch * 4)
    cost = pl.CostEstimate(flops=flops, transcendentals=0,
                           bytes_accessed=bytes_accessed)

    out = pl.pallas_call(
        critic_kernel,
        out_shape=jax.ShapeDtypeStruct((padded_batch, 1), jnp.float32),
        grid=grid,
        in_specs=[state_spec, action_spec,
                  resident(w1), resident(b1),
                  resident(w2q), resident(w2a), resident(b2),
                  resident(w3r), resident(b3)],
        out_specs=out_spec,
        compiler_params=pltpu.CompilerParams(
            dimension_semantics=("parallel",),
            vmem_limit_bytes=vmem_limit),
        cost_estimate=cost,
    )(state, action, w1, b1, w2q, w2a, b2, w3r, b3)

    return out if padded_batch == batch else out[:batch]


def init_critic_params(key, state_dim, action_dim, hidden_sizes=(400, 300)):
    """Deterministic init mimicking PyTorch nn.Linear default (U(-k, k), k=1/sqrt(fan_in)).
    Weights stored as [in_features, out_features] (transposed vs. PyTorch)."""
    h1, h2 = hidden_sizes
    ks = jax.random.split(key, 6)

    def uni(k, shape, fan_in):
        bound = 1.0 / jnp.sqrt(jnp.float32(fan_in))
        return jax.random.uniform(k, shape, jnp.float32, -bound, bound)

    w1 = uni(ks[0], (state_dim, h1), state_dim)
    b1 = uni(ks[1], (1, h1), state_dim)
    # l2 takes cat([q, action]) of width h1 + action_dim; split its weight.
    w2 = uni(ks[2], (h1 + action_dim, h2), h1 + action_dim)
    w2q = w2[:h1, :]
    w2a = w2[h1:, :]
    b2 = uni(ks[3], (1, h2), h1 + action_dim)
    w3 = uni(ks[4], (h2, 1), h2)
    b3 = uni(ks[5], (1, 1), h2)
    return (w1, b1, w2q, w2a, b2, w3, b3)


def prepare_critic_params(params, compute_dtype=jnp.float32):
    """One-time layout/precision prep.

    Default f32 keeps Q-value parity with the f32 PyTorch Critic (perf-review
    correctness note); pass compute_dtype=jnp.bfloat16 to halve weight traffic
    when exact parity is not needed (accumulation stays f32 either way)."""
    w1, b1, w2q, w2a, b2, w3, b3 = params
    return (w1.astype(compute_dtype),
            b1.astype(jnp.float32),
            w2q.astype(compute_dtype),
            w2a.astype(compute_dtype),
            b2.astype(jnp.float32),
            w3.reshape(1, -1).astype(compute_dtype),   # (1, H2) row for VPU path
            b3.reshape(1, 1).astype(jnp.float32))


def critic_ref(state, action, prepared_params):
    """Pure-JAX reference with the same precision policy as the kernel."""
    w1, b1, w2q, w2a, b2, w3r, b3 = prepared_params
    s = state.astype(w1.dtype)
    a = action.astype(w1.dtype)
    h1 = jnp.maximum(
        jnp.dot(s, w1, preferred_element_type=jnp.float32) + b1, 0.0)
    h2 = jnp.maximum(
        jnp.dot(h1.astype(w2q.dtype), w2q, preferred_element_type=jnp.float32)
        + jnp.dot(a.astype(jnp.float32), w2a.astype(jnp.float32),
                  preferred_element_type=jnp.float32)
        + b2, 0.0)
    return jnp.sum(h2 * w3r.astype(jnp.float32), axis=-1, keepdims=True) + b3


if __name__ == "__main__":
    # Small, module-consistent shapes.
    state_dim, action_dim = 16, 8
    hidden_sizes = (64, 32)

    key = jax.random.PRNGKey(0)
    k_state, k_action, k_params = jax.random.split(key, 3)
    raw_params = init_critic_params(k_params, state_dim, action_dim, hidden_sizes)
    params = prepare_critic_params(raw_params)          # f32 by default

    # Case 1: tiny batch -> single full-array tile.
    batch = 8
    state = jax.random.normal(k_state, (batch, state_dim), jnp.float32)
    action = jax.random.normal(k_action, (batch, action_dim), jnp.float32)
    out = critic_forward(state, action, params)
    jax.block_until_ready(out)
    expected = critic_ref(state, action, params)
    assert out.shape == (batch, 1)
    assert jnp.allclose(out, expected, atol=2e-3, rtol=2e-3), (
        float(jnp.max(jnp.abs(out - expected))))

    # Case 2: non-multiple batch -> 2 grid steps + wrapper padding path.
    batch2 = 40
    state2 = jax.random.normal(k_state, (batch2, state_dim), jnp.float32)
    action2 = jax.random.normal(k_action, (batch2, action_dim), jnp.float32)
    out2 = critic_forward(state2, action2, params)
    jax.block_until_ready(out2)
    expected2 = critic_ref(state2, action2, params)
    assert out2.shape == (batch2, 1)
    assert jnp.allclose(out2, expected2, atol=2e-3, rtol=2e-3), (
        float(jnp.max(jnp.abs(out2 - expected2))))

    print("KERNEL_OK")
</pallas_src>

<mosaic_0001>
module attributes {stable_mosaic.version = 11 : i64} {
  func.func @critic_kernel(%arg0: i32, %arg1: memref<8x16xf32, #tpu.memory_space<vmem>>, %arg2: memref<8x8xf32, #tpu.memory_space<vmem>>, %arg3: memref<16x64xf32, #tpu.memory_space<vmem>>, %arg4: memref<1x64xf32, #tpu.memory_space<vmem>>, %arg5: memref<64x32xf32, #tpu.memory_space<vmem>>, %arg6: memref<8x32xf32, #tpu.memory_space<vmem>>, %arg7: memref<1x32xf32, #tpu.memory_space<vmem>>, %arg8: memref<1x32xf32, #tpu.memory_space<vmem>>, %arg9: memref<1x1xf32, #tpu.memory_space<vmem>>, %arg10: memref<8x1xf32, #tpu.memory_space<vmem>>) attributes {dimension_semantics = [#tpu.dimension_semantics<parallel>], iteration_bounds = array<i64: 1>, scalar_prefetch = 0 : i64, scratch_operands = 0 : i64, tpu.core_type = #tpu.core_type<tc>, window_params = [{transform_indices = @transform_0, window_bounds = array<i64: 8, 16>}, {transform_indices = @transform_1, window_bounds = array<i64: 8, 8>}, {pipeline_mode = #tpu.pipeline_mode<synchronous>, transform_indices = @transform_2, window_bounds = array<i64: 16, 64>}, {pipeline_mode = #tpu.pipeline_mode<synchronous>, transform_indices = @transform_3, window_bounds = array<i64: 1, 64>}, {pipeline_mode = #tpu.pipeline_mode<synchronous>, transform_indices = @transform_4, window_bounds = array<i64: 64, 32>}, {pipeline_mode = #tpu.pipeline_mode<synchronous>, transform_indices = @transform_5, window_bounds = array<i64: 8, 32>}, {pipeline_mode = #tpu.pipeline_mode<synchronous>, transform_indices = @transform_6, window_bounds = array<i64: 1, 32>}, {pipeline_mode = #tpu.pipeline_mode<synchronous>, transform_indices = @transform_7, window_bounds = array<i64: 1, 32>}, {pipeline_mode = #tpu.pipeline_mode<synchronous>, transform_indices = @transform_8, window_bounds = array<i64: 1, 1>}, {transform_indices = @transform_9, window_bounds = array<i64: 8, 1>}]} {
    %c0 = arith.constant 0 : index
    %c0_0 = arith.constant 0 : index
    %0 = vector.load %arg1[%c0, %c0_0] : memref<8x16xf32, #tpu.memory_space<vmem>>, vector<8x16xf32>
    %c0_1 = arith.constant 0 : index
    %c0_2 = arith.constant 0 : index
    %1 = vector.load %arg3[%c0_1, %c0_2] : memref<16x64xf32, #tpu.memory_space<vmem>>, vector<16x64xf32>
    %cst = arith.constant dense<0.000000e+00> : vector<8x64xf32>
    %2 = tpu.matmul %0, %1, %cst {dimension_numbers = #tpu.dot_dimension_numbers<[1], [0], [0], [1], [0, 0, 1, 1], [], []>} : vector<8x16xf32>, vector<16x64xf32>, vector<8x64xf32> -> vector<8x64xf32>
    %c0_3 = arith.constant 0 : index
    %c0_4 = arith.constant 0 : index
    %3 = vector.load %arg4[%c0_3, %c0_4] : memref<1x64xf32, #tpu.memory_space<vmem>>, vector<1x64xf32>
    %4 = vector.broadcast %3 : vector<1x64xf32> to vector<8x64xf32>
    %5 = arith.addf %2, %4 : vector<8x64xf32>
    %cst_5 = arith.constant 0.000000e+00 : f32
    %6 = vector.broadcast %cst_5 : f32 to vector<8x64xf32>
    %7 = arith.maximumf %5, %6 : vector<8x64xf32>
    %c0_6 = arith.constant 0 : index
    %c0_7 = arith.constant 0 : index
    %8 = vector.load %arg5[%c0_6, %c0_7] : memref<64x32xf32, #tpu.memory_space<vmem>>, vector<64x32xf32>
    %cst_8 = arith.constant dense<0.000000e+00> : vector<8x32xf32>
    %9 = tpu.matmul %7, %8, %cst_8 {dimension_numbers = #tpu.dot_dimension_numbers<[1], [0], [0], [1], [0, 0, 1, 1], [], []>} : vector<8x64xf32>, vector<64x32xf32>, vector<8x32xf32> -> vector<8x32xf32>
    %c0_9 = arith.constant 0 : index
    %c0_10 = arith.constant 0 : index
    %10 = vector.load %arg7[%c0_9, %c0_10] : memref<1x32xf32, #tpu.memory_space<vmem>>, vector<1x32xf32>
    %11 = vector.broadcast %10 : vector<1x32xf32> to vector<8x32xf32>
    %12 = arith.addf %9, %11 : vector<8x32xf32>
    %c0_11 = arith.constant 0 : index
    %c0_12 = arith.constant 0 : index
    %13 = vector.load %arg2[%c0_11, %c0_12] : memref<8x8xf32, #tpu.memory_space<vmem>>, vector<8x8xf32>
    %c0_13 = arith.constant 0 : index
    %c0_14 = arith.constant 0 : index
    %14 = vector.load %arg6[%c0_13, %c0_14] : memref<8x32xf32, #tpu.memory_space<vmem>>, vector<8x32xf32>
    %15 = vector.extract_strided_slice %13 {offsets = [0, 0], sizes = [8, 1], strides = [1, 1]} : vector<8x8xf32> to vector<8x1xf32>
    %16 = vector.extract_strided_slice %14 {offsets = [0, 0], sizes = [1, 32], strides = [1, 1]} : vector<8x32xf32> to vector<1x32xf32>
    %17 = vector.broadcast %15 : vector<8x1xf32> to vector<8x32xf32>
    %18 = vector.broadcast %16 : vector<1x32xf32> to vector<8x32xf32>
    %19 = arith.mulf %17, %18 : vector<8x32xf32>
    %20 = arith.addf %12, %19 : vector<8x32xf32>
    %21 = vector.extract_strided_slice %13 {offsets = [0, 1], sizes = [8, 1], strides = [1, 1]} : vector<8x8xf32> to vector<8x1xf32>
    %22 = vector.extract_strided_slice %14 {offsets = [1, 0], sizes = [1, 32], strides = [1, 1]} : vector<8x32xf32> to vector<1x32xf32>
    %23 = vector.broadcast %21 : vector<8x1xf32> to vector<8x32xf32>
    %24 = vector.broadcast %22 : vector<1x32xf32> to vector<8x32xf32>
    %25 = arith.mulf %23, %24 : vector<8x32xf32>
    %26 = arith.addf %20, %25 : vector<8x32xf32>
    %27 = vector.extract_strided_slice %13 {offsets = [0, 2], sizes = [8, 1], strides = [1, 1]} : vector<8x8xf32> to vector<8x1xf32>
    %28 = vector.extract_strided_slice %14 {offsets = [2, 0], sizes = [1, 32], strides = [1, 1]} : vector<8x32xf32> to vector<1x32xf32>
    %29 = vector.broadcast %27 : vector<8x1xf32> to vector<8x32xf32>
    %30 = vector.broadcast %28 : vector<1x32xf32> to vector<8x32xf32>
    %31 = arith.mulf %29, %30 : vector<8x32xf32>
    %32 = arith.addf %26, %31 : vector<8x32xf32>
    %33 = vector.extract_strided_slice %13 {offsets = [0, 3], sizes = [8, 1], strides = [1, 1]} : vector<8x8xf32> to vector<8x1xf32>
    %34 = vector.extract_strided_slice %14 {offsets = [3, 0], sizes = [1, 32], strides = [1, 1]} : vector<8x32xf32> to vector<1x32xf32>
    %35 = vector.broadcast %33 : vector<8x1xf32> to vector<8x32xf32>
    %36 = vector.broadcast %34 : vector<1x32xf32> to vector<8x32xf32>
    %37 = arith.mulf %35, %36 : vector<8x32xf32>
    %38 = arith.addf %32, %37 : vector<8x32xf32>
    %39 = vector.extract_strided_slice %13 {offsets = [0, 4], sizes = [8, 1], strides = [1, 1]} : vector<8x8xf32> to vector<8x1xf32>
    %40 = vector.extract_strided_slice %14 {offsets = [4, 0], sizes = [1, 32], strides = [1, 1]} : vector<8x32xf32> to vector<1x32xf32>
    %41 = vector.broadcast %39 : vector<8x1xf32> to vector<8x32xf32>
    %42 = vector.broadcast %40 : vector<1x32xf32> to vector<8x32xf32>
    %43 = arith.mulf %41, %42 : vector<8x32xf32>
    %44 = arith.addf %38, %43 : vector<8x32xf32>
    %45 = vector.extract_strided_slice %13 {offsets = [0, 5], sizes = [8, 1], strides = [1, 1]} : vector<8x8xf32> to vector<8x1xf32>
    %46 = vector.extract_strided_slice %14 {offsets = [5, 0], sizes = [1, 32], strides = [1, 1]} : vector<8x32xf32> to vector<1x32xf32>
    %47 = vector.broadcast %45 : vector<8x1xf32> to vector<8x32xf32>
    %48 = vector.broadcast %46 : vector<1x32xf32> to vector<8x32xf32>
    %49 = arith.mulf %47, %48 : vector<8x32xf32>
    %50 = arith.addf %44, %49 : vector<8x32xf32>
    %51 = vector.extract_strided_slice %13 {offsets = [0, 6], sizes = [8, 1], strides = [1, 1]} : vector<8x8xf32> to vector<8x1xf32>
    %52 = vector.extract_strided_slice %14 {offsets = [6, 0], sizes = [1, 32], strides = [1, 1]} : vector<8x32xf32> to vector<1x32xf32>
    %53 = vector.broadcast %51 : vector<8x1xf32> to vector<8x32xf32>
    %54 = vector.broadcast %52 : vector<1x32xf32> to vector<8x32xf32>
    %55 = arith.mulf %53, %54 : vector<8x32xf32>
    %56 = arith.addf %50, %55 : vector<8x32xf32>
    %57 = vector.extract_strided_slice %13 {offsets = [0, 7], sizes = [8, 1], strides = [1, 1]} : vector<8x8xf32> to vector<8x1xf32>
    %58 = vector.extract_strided_slice %14 {offsets = [7, 0], sizes = [1, 32], strides = [1, 1]} : vector<8x32xf32> to vector<1x32xf32>
    %59 = vector.broadcast %57 : vector<8x1xf32> to vector<8x32xf32>
    %60 = vector.broadcast %58 : vector<1x32xf32> to vector<8x32xf32>
    %61 = arith.mulf %59, %60 : vector<8x32xf32>
    %62 = arith.addf %56, %61 : vector<8x32xf32>
    %cst_15 = arith.constant 0.000000e+00 : f32
    %63 = vector.broadcast %cst_15 : f32 to vector<8x32xf32>
    %64 = arith.maximumf %62, %63 : vector<8x32xf32>
    %c0_16 = arith.constant 0 : index
    %c0_17 = arith.constant 0 : index
    %65 = vector.load %arg8[%c0_16, %c0_17] : memref<1x32xf32, #tpu.memory_space<vmem>>, vector<1x32xf32>
    %66 = vector.broadcast %65 : vector<1x32xf32> to vector<8x32xf32>
    %67 = arith.mulf %64, %66 : vector<8x32xf32>
    %cst_18 = arith.constant dense<0.000000e+00> : vector<8xf32>
    %68 = vector.multi_reduction <add>, %67, %cst_18 [1] : vector<8x32xf32> to vector<8xf32>
    %69 = vector.shape_cast %68 : vector<8xf32> to vector<8x1xf32>
    %c0_19 = arith.constant 0 : index
    %c0_20 = arith.constant 0 : index
    %70 = vector.load %arg9[%c0_19, %c0_20] : memref<1x1xf32, #tpu.memory_space<vmem>>, vector<1x1xf32>
    %71 = vector.broadcast %70 : vector<1x1xf32> to vector<8x1xf32>
    %72 = arith.addf %69, %71 : vector<8x1xf32>
    %c0_21 = arith.constant 0 : index
    %c0_22 = arith.constant 0 : index
    %73 = vector.load %arg10[%c0_21, %c0_22] : memref<8x1xf32, #tpu.memory_space<vmem>>, vector<8x1xf32>
    tpu.vector_store %arg10[%c0_21, %c0_22], %72 {strides = array<i32>} : memref<8x1xf32, #tpu.memory_space<vmem>>, vector<8x1xf32>,
    return
  }
  func.func @transform_0(%arg0: i32) -> (i32, i32) {
    %c0_i32 = arith.constant 0 : i32
    %c0_i32_0 = arith.constant 0 : i32
    return %arg0, %c0_i32 : i32, i32
  }
  func.func @transform_1(%arg0: i32) -> (i32, i32) {
    %c0_i32 = arith.constant 0 : i32
    %c0_i32_0 = arith.constant 0 : i32
    return %arg0, %c0_i32 : i32, i32
  }
  func.func @transform_2(%arg0: i32) -> (i32, i32) {
    %c0_i32 = arith.constant 0 : i32
    %c0_i32_0 = arith.constant 0 : i32
    %c0_i32_1 = arith.constant 0 : i32
    return %c0_i32, %c0_i32_0 : i32, i32
  }
  func.func @transform_3(%arg0: i32) -> (i32, i32) {
    %c0_i32 = arith.constant 0 : i32
    %c0_i32_0 = arith.constant 0 : i32
    %c0_i32_1 = arith.constant 0 : i32
    return %c0_i32, %c0_i32_0 : i32, i32
  }
  func.func @transform_4(%arg0: i32) -> (i32, i32) {
    %c0_i32 = arith.constant 0 : i32
    %c0_i32_0 = arith.constant 0 : i32
    %c0_i32_1 = arith.constant 0 : i32
    return %c0_i32, %c0_i32_0 : i32, i32
  }
  func.func @transform_5(%arg0: i32) -> (i32, i32) {
    %c0_i32 = arith.constant 0 : i32
    %c0_i32_0 = arith.constant 0 : i32
    %c0_i32_1 = arith.constant 0 : i32
    return %c0_i32, %c0_i32_0 : i32, i32
  }
  func.func @transform_6(%arg0: i32) -> (i32, i32) {
    %c0_i32 = arith.constant 0 : i32
    %c0_i32_0 = arith.constant 0 : i32
    %c0_i32_1 = arith.constant 0 : i32
    return %c0_i32, %c0_i32_0 : i32, i32
  }
  func.func @transform_7(%arg0: i32) -> (i32, i32) {
    %c0_i32 = arith.constant 0 : i32
    %c0_i32_0 = arith.constant 0 : i32
    %c0_i32_1 = arith.constant 0 : i32
    return %c0_i32, %c0_i32_0 : i32, i32
  }
  func.func @transform_8(%arg0: i32) -> (i32, i32) {
    %c0_i32 = arith.constant 0 : i32
    %c0_i32_0 = arith.constant 0 : i32
    %c0_i32_1 = arith.constant 0 : i32
    return %c0_i32, %c0_i32_0 : i32, i32
  }
  func.func @transform_9(%arg0: i32) -> (i32, i32) {
    %c0_i32 = arith.constant 0 : i32
    %c0_i32_0 = arith.constant 0 : i32
    return %arg0, %c0_i32 : i32, i32
  }
}

</mosaic_0001>

<bundles_post_ra>
// kernel: tpu_custom_call.1
= control target key start
LH: loop header
LB: loop body
LE: loop exit
PB: predicated region body
PF: predicated region fallthrough
CT: control target
= control target key end

     0   :  { %v381_v0 = vmov 0.0   ;;  %vm382_vm0 = vmmov 0   ;;  %vm44_vm1 = vcmask 130048   ;;  %v383_v12 = vmov 2   ;;  %s497_s2 = inlined_call_operand.vmem [shape: f32[16,64], index: 2, kind: input, shape index: {}]   ;;  %s498_s0 = inlined_call_operand.vmem [shape: f32[8,16], index: 0, kind: input, shape index: {}]   ;;  %s499_s4 = inlined_call_operand.vmem [shape: f32[64,32], index: 4, kind: input, shape index: {}]   ;;  %s500_s1 = inlined_call_operand.vmem [shape: f32[8,8], index: 1, kind: input, shape index: {}]   ;;  %s501_s3 = inlined_call_operand.vmem [shape: f32[1,64], index: 3, kind: input, shape index: {}]   ;;  %s502_s8 = inlined_call_operand.<no memory space> [shape: f32[1,1], index: 8, kind: input, shape index: {}]   ;;  %s503_s5 = inlined_call_operand.vmem [shape: f32[8,32], index: 5, kind: input, shape index: {}]   ;;  %s504_s6 = inlined_call_operand.vmem [shape: f32[1,32], index: 6, kind: input, shape index: {}]   ;;  %s505_s7 = inlined_call_operand.vmem [shape: f32[1,32], index: 7, kind: input, shape index: {}]   ;;  %s506_s9 = inlined_call_operand.vmem [shape: f32[8,1], index: 9, kind: output, shape index: {}]  }
   0x1   :  { %336 = vmatprep.subr.mxu0 %v381_v0  ;;  %v36_v1 = vld [vmem:[%s497_s2 + $0x8] sm:$0xff]  ;;  %v35_v2 = vld [vmem:[%s497_s2] sm:$0xff]  ;;  %340 = vmatprep.mubr.msk.f32.mxu0 %vm382_vm0, %v381_v0  ;;  %v126_v4 = vld [vmem:[%s499_s4 + $0x38] sm:$0xff]  ;;  %v384_v14 = vmov 0   ;;  %v385_v15 = vmov 3   ;;  %v386_v16 = vmov 1   ;;  %v14_v26 = vstv %s502_s8 }
   0x2   :  { %337 = vmatpush3.msra.mxu0 %v36_v1  ;;  %v34_v3 = vld [vmem:[%s498_s0] sm:$0xff]  ;;  %343 = vmatprep.subr.mxu1 %v381_v0  ;;  %v125_v5 = vld [vmem:[%s499_s4 + $0x30] sm:$0xff]  ;;  %v124_v6 = vld [vmem:[%s499_s4 + $0x28] sm:$0xff]  ;;  %v387_v17 = vmov 4   ;;  %v388_v18 = vmov 5   ;;  %v389_v19 = vmov 6   ;;  %v215_v28 = vlaneseq }
   0x3   :  { %338 = vmatprep.subr.mxu0 %v381_v0  ;;  %344 = vmatpush3.msra.mxu1 %v126_v4  ;;  %v123_v7 = vld [vmem:[%s499_s4 + $0x20] sm:$0xff]  ;;  %v122_v8 = vld [vmem:[%s499_s4 + $0x18] sm:$0xff]  ;;  %v121_v9 = vld [vmem:[%s499_s4 + $0x10] sm:$0xff]  ;;  %v390_v20 = vmov 7   ;;  %vm134_vm2 = vcmask 523264   ;;  %vm300_vm3 = vcmask 261120  }
   0x4   :  { %339 = vmatpush3.msra.mxu0 %v35_v2  ;;  %345 = vmatprep.subr.mxu1 %v381_v0  ;;  %v120_v10 = vld [vmem:[%s499_s4 + $0x8] sm:$0xff]  ;;  %v119_v11 = vld [vmem:[%s499_s4] sm:$0xff]  ;;  %15 = vst [vmem:[#allocation2] sm:$0x1] %v14_v26  ;;  %v216_v29 = vshrl.u32 %v215_v28, 7  ;;  %vm312_vm4 = vcmask 7168  }
   0x5   :  { %341 = vmatmul.mubr.msk.f32.vlgmr.msra.gmra.mxu0 %vm44_vm1, %v34_v3  ;;  %346 = vmatpush3.msra.mxu1 %v125_v5  ;;  %v208_v13 = vld [vmem:[%s500_s1] sm:$0xff] }
   0x6   :  { %347 = vmatprep.subr.mxu1 %v381_v0  ;;  %359 = vmatprep.mubr.msk.f32.mxu1 %vm382_vm0, %v381_v0  ;;  %v318_v21 = vld [vmem:[%s501_s3] ss:$0 sm:$0xff]  ;;  %v217_v32 = vsub.s32 0, %v216_v29  ;;  %v227_v33 = vsub.s32 1, %v216_v29  ;;  %v237_v35 = vsub.s32 2, %v216_v29  ;;  %v247_v41 = vsub.s32 3, %v216_v29 }
   0x7   :  { %348 = vmatpush3.msra.mxu1 %v124_v6  ;;  %374 = vset.pattern.permute.xlu1 %v383_v12  ;;  %v209_v34 = vld [vmem:[%s503_s5] sm:$0xff]  ;;  %v257_v44 = vsub.s32 4, %v216_v29  ;;  %v267_v48 = vsub.s32 5, %v216_v29  ;;  %v277_v56 = vsub.s32 6, %v216_v29  ;;  %v287_v58 = vsub.s32 7, %v216_v29 }
   0x8   :  { %349 = vmatprep.subr.mxu1 %v381_v0  ;;  %372 = vset.pattern.permute.xlu0 %v384_v14  ;;  %v218_v36 = vrot.slane %v209_v34, %v217_v32  ;;  %v228_v37 = vrot.slane %v209_v34, %v227_v33  ;;  %v320_v38 = vld [vmem:[%s504_s6] ss:$0 sm:$0xff]  ;;  %v238_v42 = vrot.slane %v209_v34, %v237_v35 }
   0x9   :  { %350 = vmatpush3.msra.mxu1 %v123_v7  ;;  %232 = vperm.xlu1 %374, %v208_v13   ;;  %v248_v50 = vrot.slane %v209_v34, %v247_v41  ;;  %v258_v53 = vrot.slane %v209_v34, %v257_v44  ;;  %v268_v57 = vrot.slane %v209_v34, %v267_v48 }
   0xa   :  { %351 = vmatprep.subr.mxu1 %v381_v0  ;;  %212 = vperm.xlu0 %372, %v208_v13   ;;  %v288_v2 = vrot.slane %v209_v34, %v287_v58 }
   0xb   :  { %352 = vmatpush3.msra.mxu1 %v122_v8  ;;  %v323_v14 = vld [vmem:[#allocation2] ss:$0 sm:$0xff] }
   0xc   :  { %353 = vmatprep.subr.mxu1 %v381_v0 }
   0xd   :  { %354 = vmatpush3.msra.mxu1 %v121_v9  ;;  %375 = vset.pattern.permute.xlu1 %v385_v15 }
   0xe   :  { %355 = vmatprep.subr.mxu1 %v381_v0  ;;  %373 = vset.pattern.permute.xlu0 %v386_v16 }
   0xf   :  { %356 = vmatpush3.msra.mxu1 %v120_v10  ;;  %242 = vperm.xlu1 %375, %v208_v13   ;;  %v322_v10 = vld [vmem:[%s505_s7] ss:$0 sm:$0xff] }
  0x10   :  { %357 = vmatprep.subr.mxu1 %v381_v0  ;;  %222 = vperm.xlu0 %373, %v208_v13   ;;  %v278_v0 = vrot.slane %v209_v34, %v277_v56 }
  0x11   :  { %358 = vmatpush3.msra.mxu1 %v119_v11 }
  0x13   :  { %376 = vset.pattern.permute.xlu1 %v387_v17 }
  0x14   :  { %377 = vset.pattern.permute.xlu0 %v388_v18  ;;  %252 = vperm.xlu1 %376, %v208_v13  }
  0x15   :  { %262 = vperm.xlu0 %377, %v208_v13  }
  0x18   :  { %378 = vset.pattern.permute.xlu1 %v389_v19 }
  0x19   :  { %380 = vset.pattern.permute.xlu0 %v390_v20  ;;  %272 = vperm.xlu1 %378, %v208_v13  }
  0x1d   :  { %379 = vset.pattern.permute.xlu1 %v390_v20 }
  0x1e   :  { %282 = vperm.xlu1 %379, %v208_v13  }
  0x84   :  { %v233_v27 = vpop.permute.xlu1 %232 }
  0x85   :  { %v213_v30 = vpop.permute.xlu0 %212  ;;  %v239_v52 = vmul.f32 %v238_v42, %v233_v27 }
  0x86   :  { %v219_v45 = vmul.f32 %v218_v36, %v213_v30 }
  0x8a   :  { %v243_v31 = vpop.permute.xlu1 %242 }
  0x8b   :  { %v223_v39 = vpop.permute.xlu0 %222  ;;  %v249_v60 = vmul.f32 %v248_v50, %v243_v31 }
  0x8c   :  { %v229_v47 = vmul.f32 %v228_v37, %v223_v39 }
  0x8f   :  { %v253_v40 = vpop.permute.xlu1 %252 }
  0x90   :  { %v263_v59 = vpop.permute.xlu0 %262  ;;  %v259_v62 = vmul.f32 %v258_v53, %v253_v40 }
  0x91   :  { %v269_v1 = vmul.f32 %v268_v57, %v263_v59 }
  0x94   :  { %v273_v54 = vpop.permute.xlu1 %272 }
  0x95   :  { %v279_v5 = vmul.f32 %v278_v0, %v273_v54 }
  0x99   :  { %v283_v3 = vpop.permute.xlu1 %282 }
  0x9a   :  { %v289_v7 = vmul.f32 %v288_v2, %v283_v3 }
  0xc5   :  { %v114_v22 = vpop.f32.mrf.mxu0 }
  0xc6   :  { %v115_v23 = vadd.f32 %v318_v21, %v114_v22 }
  0xc7   :  { %v342_v24 = vpop.f32.mrf.mxu0 }
  0xc8   :  { %v118_v25 = vmax.f32 %v115_v23, 0.0 }
  0xca   :  { %360 = vmatmul.mubr.msk.f32.vlgmr.msra.gmra.mxu1 %vm134_vm2, %v118_v25 }
 0x18a   :  { %v204_v43 = vpop.f32.mrf.mxu1 }
 0x18b   :  { %v205_v46 = vadd.f32 %v320_v38, %v204_v43 }
 0x18c   :  { %v361_v49 = vpop.f32.mrf.mxu1 }
 0x18d   :  { %v220_v51 = vadd.f32 %v219_v45, %v205_v46 }
 0x18f   :  { %v230_v55 = vadd.f32 %v229_v47, %v220_v51 }
 0x191   :  { %v240_v61 = vadd.f32 %v239_v52, %v230_v55 }
 0x193   :  { %v250_v63 = vadd.f32 %v249_v60, %v240_v61 }
 0x195   :  { %v260_v4 = vadd.f32 %v259_v62, %v250_v63 }
 0x197   :  { %v270_v6 = vadd.f32 %v269_v1, %v260_v4 }
 0x199   :  { %v280_v8 = vadd.f32 %v279_v5, %v270_v6 }
 0x19b   :  { %v290_v9 = vadd.f32 %v289_v7, %v280_v8 }
 0x19d   :  { %v291_v11 = vmax.f32 %v290_v9, 0.0 }
 0x19f   :  { %v299_v12 = vmul.f32 %v322_v10, %v291_v11 }
 0x1a1   :  { %v301_v13 = vsel %vm300_vm3, %v299_v12, 0.0 }
 0x1a2   :  { %302 = vadd.xlane.f32.xlu0 %v301_v13 }
 0x22b   :  { %v303_v15 = vpop.xlane.xlu0 %302 }
 0x22c   :  { %v311_v16 = vadd.f32 %v323_v14, %v303_v15 }
 0x22e   :  { %313 = vst.msk [vmem:[%s506_s9] sm:$0xff] %vm312_vm4, %v311_v16 }

</bundles_post_ra>
